<compile_context>
chip_gen: v7x
topology: tpu7x:2x2x1
jax: 0.10.0
libtpu: 0.0.40
codegen_flags: <defaults>
</compile_context>

<pallas_src>
import jax
import jax.numpy as jnp
from jax.experimental import pallas as pl
from jax.experimental.pallas import tpu as pltpu

# ----------------------------- config (small) -------------------------------
B = 2                     # batch
C_IN = 4                  # input channels
SP = 16                   # spatial (H = W = 16)
D = C_IN * SP * SP        # flattened feature dim = 1024
HIDDEN = 32               # backbone hidden width
NUM_HEADS = 4             # shallow-ensemble heads
CLASSES = 8               # number of classes


# ------------------------------- kernel -------------------------------------
def ensemble_mean_logits_kernel(x_ref, w1_ref, b1_ref, w2m_ref, b2m_ref, out_ref):
    """Fused: h = relu(x @ w1 + b1);  out = h @ w2_mean + b2_mean.

    The head-mean is folded into w2_mean / b2_mean (exact, mean over heads is
    linear).  Both matmuls run bf16 x bf16 with f32 accumulation on the MXU;
    the bias/ReLU epilogue and the final bias-add stay in f32.
    """
    h = jnp.dot(x_ref[...], w1_ref[...], preferred_element_type=jnp.float32)
    h = jnp.maximum(h + b1_ref[...], 0.0)                         # [B, HIDDEN] f32

    logits = jnp.dot(h.astype(jnp.bfloat16), w2m_ref[...],
                     preferred_element_type=jnp.float32)          # [B, CLASSES] f32
    out_ref[...] = (logits + b2m_ref[...]).astype(out_ref.dtype)


# --------------------- one-time parameter preparation ------------------------
def prepare_params(w1, b1, w2, b2):
    """Hoisted out of the per-call path: fold head-mean + cast dtypes once."""
    w1_bf16 = w1.astype(jnp.bfloat16)                             # [D, HIDDEN]
    b1_f32 = b1.astype(jnp.float32)                               # [1, HIDDEN]
    w2_mean = jnp.mean(w2.astype(jnp.float32), axis=0)            # [HIDDEN, CLASSES]
    b2_mean = jnp.mean(b2.astype(jnp.float32), axis=0)[None, :]   # [1, CLASSES]
    return w1_bf16, b1_f32, w2_mean.astype(jnp.bfloat16), b2_mean


_COST = pl.CostEstimate(
    flops=2 * B * D * HIDDEN + 2 * B * HIDDEN * CLASSES,
    transcendentals=0,
    bytes_accessed=(B * D * 2 + D * HIDDEN * 2 + HIDDEN * 4
                    + HIDDEN * CLASSES * 2 + CLASSES * 4 + B * CLASSES * 4),
)


# ------------------------------ forward --------------------------------------
@jax.jit
def shallow_ensemble_forward(x_nchw, w1_bf16, b1_f32, w2m_bf16, b2m_f32):
    """x_nchw: [B, C, H, W] -> head-averaged logits [B, CLASSES] (f32)."""
    x_flat = x_nchw.reshape(x_nchw.shape[0], -1)                  # [B, D] bf16

    return pl.pallas_call(
        ensemble_mean_logits_kernel,
        out_shape=jax.ShapeDtypeStruct((x_flat.shape[0], CLASSES), jnp.float32),
        in_specs=[
            pl.BlockSpec(memory_space=pltpu.VMEM),  # x       [B, D]            bf16
            pl.BlockSpec(memory_space=pltpu.VMEM),  # w1      [D, HIDDEN]       bf16
            pl.BlockSpec(memory_space=pltpu.VMEM),  # b1      [1, HIDDEN]       f32
            pl.BlockSpec(memory_space=pltpu.VMEM),  # w2_mean [HIDDEN, CLASSES] bf16
            pl.BlockSpec(memory_space=pltpu.VMEM),  # b2_mean [1, CLASSES]      f32
        ],
        out_specs=pl.BlockSpec(memory_space=pltpu.VMEM),
        cost_estimate=_COST,
    )(x_flat, w1_bf16, b1_f32, w2m_bf16, b2m_f32)


# ------------------------------- reference -----------------------------------
def reference_forward(x_nchw, w1, b1, w2, b2):
    """Pure-JAX reference of the ORIGINAL structure (per-head logits, then
    mean over heads), all in f32."""
    x_flat = x_nchw.reshape(x_nchw.shape[0], -1).astype(jnp.float32)
    w1f = w1.astype(jnp.float32)
    h = jnp.maximum(jnp.dot(x_flat, w1f, precision="highest") + b1, 0.0)
    logits = jnp.einsum("bh,nhc->bnc", h, w2, precision="highest") + b2[None, :, :]
    return logits.mean(axis=1)                                    # forward()


# --------------------------------- main ---------------------------------------
if __name__ == "__main__":
    key = jax.random.PRNGKey(0)
    kx, kw1, kb1, kw2, kb2 = jax.random.split(key, 5)

    # Deterministic synthetic input + parameters.  x / w1 are created as bf16
    # (exact bf16 values, so the f32 reference sees identical numbers).
    x = jax.random.normal(kx, (B, C_IN, SP, SP), dtype=jnp.float32).astype(jnp.bfloat16)
    w1 = (jax.random.normal(kw1, (D, HIDDEN), dtype=jnp.float32) * 0.02).astype(jnp.bfloat16)
    b1 = jax.random.normal(kb1, (1, HIDDEN), dtype=jnp.float32) * 0.02
    w2 = jax.random.normal(kw2, (NUM_HEADS, HIDDEN, CLASSES), dtype=jnp.float32) * 0.05
    b2 = jax.random.normal(kb2, (NUM_HEADS, CLASSES), dtype=jnp.float32) * 0.05

    # One-time prep (folding + casts) — NOT in the per-call path.
    w1_p, b1_p, w2m_p, b2m_p = prepare_params(w1, b1, w2, b2)
    w1_p, b1_p, w2m_p, b2m_p = jax.block_until_ready((w1_p, b1_p, w2m_p, b2m_p))

    out = shallow_ensemble_forward(x, w1_p, b1_p, w2m_p, b2m_p)
    out = jax.block_until_ready(out)

    ref = reference_forward(x, w1, b1, w2, b2)
    assert out.shape == (B, CLASSES), out.shape
    # 5e-3 budget covers the bf16 rounding of h / w2_mean in the second matmul
    # (expected error ~5e-4); the head-mean fold itself is exact.
    assert jnp.allclose(out, ref, atol=5e-3, rtol=5e-3), (out, ref)

    # TODO(synk): predict_with_uncertainty (softmax/entropy statistics) is not
    # part of forward(); only the head-mean logits path is implemented here.
    print("KERNEL_OK")
</pallas_src>

<mosaic_0001>
module attributes {stable_mosaic.version = 11 : i64} {
  func.func @ensemble_mean_logits_kernel(%arg0: memref<2x1024xbf16, #tpu.memory_space<vmem>>, %arg1: memref<1024x32xbf16, #tpu.memory_space<vmem>>, %arg2: memref<1x32xf32, #tpu.memory_space<vmem>>, %arg3: memref<32x8xbf16, #tpu.memory_space<vmem>>, %arg4: memref<1x8xf32, #tpu.memory_space<vmem>>, %arg5: memref<2x8xf32, #tpu.memory_space<vmem>>) attributes {dimension_semantics = [], scalar_prefetch = 0 : i64, scratch_operands = 0 : i64, tpu.core_type = #tpu.core_type<tc>} {
    %c0 = arith.constant 0 : index
    %c0_0 = arith.constant 0 : index
    %0 = vector.load %arg0[%c0, %c0_0] : memref<2x1024xbf16, #tpu.memory_space<vmem>>, vector<2x1024xbf16>
    %c0_1 = arith.constant 0 : index
    %c0_2 = arith.constant 0 : index
    %1 = vector.load %arg1[%c0_1, %c0_2] : memref<1024x32xbf16, #tpu.memory_space<vmem>>, vector<1024x32xbf16>
    %cst = arith.constant dense<0.000000e+00> : vector<2x32xf32>
    %2 = tpu.matmul %0, %1, %cst {dimension_numbers = #tpu.dot_dimension_numbers<[1], [0], [0], [1], [0, 0, 1, 1], [], []>} : vector<2x1024xbf16>, vector<1024x32xbf16>, vector<2x32xf32> -> vector<2x32xf32>
    %c0_3 = arith.constant 0 : index
    %c0_4 = arith.constant 0 : index
    %3 = vector.load %arg2[%c0_3, %c0_4] : memref<1x32xf32, #tpu.memory_space<vmem>>, vector<1x32xf32>
    %4 = vector.broadcast %3 : vector<1x32xf32> to vector<2x32xf32>
    %5 = arith.addf %2, %4 : vector<2x32xf32>
    %cst_5 = arith.constant 0.000000e+00 : f32
    %6 = vector.broadcast %cst_5 : f32 to vector<2x32xf32>
    %7 = arith.maximumf %5, %6 : vector<2x32xf32>
    %8 = arith.truncf %7 : vector<2x32xf32> to vector<2x32xbf16>
    %c0_6 = arith.constant 0 : index
    %c0_7 = arith.constant 0 : index
    %9 = vector.load %arg3[%c0_6, %c0_7] : memref<32x8xbf16, #tpu.memory_space<vmem>>, vector<32x8xbf16>
    %cst_8 = arith.constant dense<0.000000e+00> : vector<2x8xf32>
    %10 = tpu.matmul %8, %9, %cst_8 {dimension_numbers = #tpu.dot_dimension_numbers<[1], [0], [0], [1], [0, 0, 1, 1], [], []>} : vector<2x32xbf16>, vector<32x8xbf16>, vector<2x8xf32> -> vector<2x8xf32>
    %c0_9 = arith.constant 0 : index
    %c0_10 = arith.constant 0 : index
    %11 = vector.load %arg4[%c0_9, %c0_10] : memref<1x8xf32, #tpu.memory_space<vmem>>, vector<1x8xf32>
    %12 = vector.broadcast %11 : vector<1x8xf32> to vector<2x8xf32>
    %13 = arith.addf %10, %12 : vector<2x8xf32>
    %c0_11 = arith.constant 0 : index
    %c0_12 = arith.constant 0 : index
    %14 = vector.load %arg5[%c0_11, %c0_12] : memref<2x8xf32, #tpu.memory_space<vmem>>, vector<2x8xf32>
    tpu.vector_store %arg5[%c0_11, %c0_12], %13 {strides = array<i32>} : memref<2x8xf32, #tpu.memory_space<vmem>>, vector<2x8xf32>,
    return
  }
}

</mosaic_0001>

<bundles_post_ra>
// kernel: shallow_ensemble_forward.1
= control target key start
LH: loop header
LB: loop body
LE: loop exit
PB: predicated region body
PF: predicated region fallthrough
CT: control target
= control target key end

     0   :  { %v163_v28 = vlaneseq  ;;  %v1108_v36 = vmov 1966171168   ;;  %s1374_s0 = inlined_call_operand.vmem [shape: bf16[2,1024], index: 0, kind: input, shape index: {}]   ;;  %s1375_s1 = inlined_call_operand.vmem [shape: bf16[1024,32], index: 1, kind: input, shape index: {}]   ;;  %s1376_s2 = inlined_call_operand.vmem [shape: f32[1,32], index: 2, kind: input, shape index: {}]   ;;  %s1377_s3 = inlined_call_operand.vmem [shape: bf16[32,8], index: 3, kind: input, shape index: {}]   ;;  %s1378_s4 = inlined_call_operand.vmem [shape: f32[1,8], index: 4, kind: input, shape index: {}]   ;;  %s1379_s5 = inlined_call_operand.hbm [shape: f32[2,8], index: 5, kind: output, shape index: {}]  }
   0x1   :  { %v1017_v0 = vld [vmem:[%s1375_s1 + $0x40] sm:$0xff]   ;;  %v1021_v4 = vld [vmem:[%s1375_s1 + $0x48] sm:$0xff]   ;;  %v1025_v8 = vld [vmem:[%s1375_s1 + $0x50] sm:$0xff]   ;;  %v161_v37 = vunpack.c.l.s4 %v1108_v36 }
   0x2   :  { %v1018_v1 = vld [vmem:[%s1375_s1 + $0xc0] sm:$0xff]   ;;  %914 = vmatprep.subr.bf16.mxu0 %v1017_v0  ;;  %v1022_v5 = vld [vmem:[%s1375_s1 + $0xc8] sm:$0xff]   ;;  %v1026_v9 = vld [vmem:[%s1375_s1 + $0xd0] sm:$0xff]   ;;  %v164_v33 = vshrl.u32 %v163_v28, 7 }
   0x3   :  { %v1019_v2 = vld [vmem:[%s1375_s1] sm:$0xff]   ;;  %936 = vmatprep.subr.bf16.mxu1 %v1018_v1  ;;  %v1023_v6 = vld [vmem:[%s1375_s1 + $0x8] sm:$0xff]   ;;  %v1027_v10 = vld [vmem:[%s1375_s1 + $0x10] sm:$0xff]   ;;  %v162_v40 = vunpack.c.0.s8 %v161_v37 }
   0x4   :  { %v1020_v3 = vld [vmem:[%s1375_s1 + $0x80] sm:$0xff]   ;;  %915 = vmatpush3.bf16.msra.mxu0 %v1019_v2  ;;  %v1024_v7 = vld [vmem:[%s1375_s1 + $0x88] sm:$0xff]   ;;  %v1028_v11 = vld [vmem:[%s1375_s1 + $0x90] sm:$0xff]  }
   0x5   :  { %937 = vmatpush3.bf16.msra.mxu1 %v1020_v3  ;;  %916 = vmatprep.subr.bf16.mxu0 %v1021_v4  ;;  %v1029_v12 = vld [vmem:[%s1375_s1 + $0x58] sm:$0xff]   ;;  %v1033_v16 = vld [vmem:[%s1375_s1 + $0x60] sm:$0xff]   ;;  %v1037_v20 = vld [vmem:[%s1375_s1 + $0x68] sm:$0xff]   ;;  %v1247_v41 = vsub.s32 %v162_v40, %v164_v33 }
   0x6   :  { %938 = vmatprep.subr.bf16.mxu1 %v1022_v5  ;;  %v1030_v13 = vld [vmem:[%s1375_s1 + $0xd8] sm:$0xff]   ;;  %v1034_v17 = vld [vmem:[%s1375_s1 + $0xe0] sm:$0xff]   ;;  %v1038_v21 = vld [vmem:[%s1375_s1 + $0xe8] sm:$0xff]  }
   0x7   :  { %v1031_v14 = vld [vmem:[%s1375_s1 + $0x18] sm:$0xff]   ;;  %v1035_v18 = vld [vmem:[%s1375_s1 + $0x20] sm:$0xff]   ;;  %v1039_v22 = vld [vmem:[%s1375_s1 + $0x28] sm:$0xff]  }
   0x8   :  { %917 = vmatpush3.bf16.msra.mxu0 %v1023_v6  ;;  %v1032_v15 = vld [vmem:[%s1375_s1 + $0x98] sm:$0xff]   ;;  %v1036_v19 = vld [vmem:[%s1375_s1 + $0xa0] sm:$0xff]   ;;  %v1040_v23 = vld [vmem:[%s1375_s1 + $0xa8] sm:$0xff]  }
   0x9   :  { %939 = vmatpush3.bf16.msra.mxu1 %v1024_v7  ;;  %918 = vmatprep.subr.bf16.mxu0 %v1025_v8  ;;  %v1041_v24 = vld [vmem:[%s1375_s1 + $0x70] sm:$0xff]   ;;  %v1045_v29 = vld [vmem:[%s1375_s1 + $0x78] sm:$0xff]   ;;  %v22_v34 = vld [vmem:[%s1374_s0] sm:$0xff] }
   0xa   :  { %940 = vmatprep.subr.bf16.mxu1 %v1026_v9  ;;  %v1042_v25 = vld [vmem:[%s1375_s1 + $0xf0] sm:$0xff]   ;;  %v1046_v30 = vld [vmem:[%s1375_s1 + $0xf8] sm:$0xff]   ;;  %v1050_v35 = vld [vmem:[%s1375_s1 + $0x140] sm:$0xff]   ;;  %v159_v39 = vcombine.high %v22_v34, %v22_v34  ;;  %v166_v42 = vrot.slane %v22_v34, %v1247_v41 }
   0xb   :  { %v1043_v26 = vld [vmem:[%s1375_s1 + $0x30] sm:$0xff]   ;;  %v1047_v31 = vld [vmem:[%s1375_s1 + $0x38] sm:$0xff]   ;;  %v1051_v38 = vld [vmem:[%s1375_s1 + $0x1c0] sm:$0xff]  }
   0xc   :  { %919 = vmatpush3.bf16.msra.mxu0 %v1027_v10  ;;  %v1044_v27 = vld [vmem:[%s1375_s1 + $0xb0] sm:$0xff]   ;;  %v1048_v32 = vld [vmem:[%s1375_s1 + $0xb8] sm:$0xff]   ;;  %v1251_v43 = vrot.slane %v159_v39, %v1247_v41  ;;  %v174_v44 = vcombine.high %v166_v42, %v166_v42  ;;  %v182_v45 = vrot.slane %v166_v42, %v1247_v41  ;;  %v1052_v47 = vld [vmem:[%s1375_s1 + $0x100] sm:$0xff]  }
   0xd   :  { %941 = vmatpush3.bf16.msra.mxu1 %v1028_v11  ;;  %920 = vmatprep.subr.bf16.mxu0 %v1029_v12  ;;  %v1053_v49 = vld [vmem:[%s1375_s1 + $0x180] sm:$0xff]   ;;  %v1054_v52 = vld [vmem:[%s1375_s1 + $0x148] sm:$0xff]   ;;  %v1058_v58 = vld [vmem:[%s1375_s1 + $0x150] sm:$0xff]  }
   0xe   :  { %942 = vmatprep.subr.bf16.mxu1 %v1030_v13  ;;  %v175_v46 = vcombine.high %v1251_v43, %v1251_v43  ;;  %v196_v48 = vrot.slane %v174_v44, %v1247_v41  ;;  %v204_v51 = vcombine.high %v182_v45, %v182_v45  ;;  %v1055_v54 = vld [vmem:[%s1375_s1 + $0x1c8] sm:$0xff]   ;;  %v1059_v59 = vld [vmem:[%s1375_s1 + $0x1d0] sm:$0xff]   ;;  %v1062_v62 = vld [vmem:[%s1375_s1 + $0x158] sm:$0xff]  }
   0xf   :  { %v1056_v55 = vld [vmem:[%s1375_s1 + $0x108] sm:$0xff]   ;;  %v1060_v60 = vld [vmem:[%s1375_s1 + $0x110] sm:$0xff]   ;;  %v1063_v63 = vld [vmem:[%s1375_s1 + $0x1d8] sm:$0xff]  }
  0x10   :  { %921 = vmatpush3.bf16.msra.mxu0 %v1031_v14  ;;  %v203_v50 = vrot.slane %v175_v46, %v1247_v41  ;;  %632 = vmatprep.mubr.bf16.mxu0 %v196_v48  ;;  %v206_v53 = vcombine.high %v196_v48, %v196_v48  ;;  %v1057_v57 = vld [vmem:[%s1375_s1 + $0x188] sm:$0xff]   ;;  %v1061_v61 = vld [vmem:[%s1375_s1 + $0x190] sm:$0xff]   ;;  %v1064_v0 = vld [vmem:[%s1375_s1 + $0x118] sm:$0xff]  }
  0x11   :  { %943 = vmatpush3.bf16.msra.mxu1 %v1032_v15  ;;  %922 = vmatprep.subr.bf16.mxu0 %v1033_v16  ;;  %v1065_v1 = vld [vmem:[%s1375_s1 + $0x198] sm:$0xff]   ;;  %v1066_v2 = vld [vmem:[%s1375_s1 + $0x160] sm:$0xff]   ;;  %v1070_v6 = vld [vmem:[%s1375_s1 + $0x168] sm:$0xff]  }
  0x12   :  { %944 = vmatprep.subr.bf16.mxu1 %v1034_v17  ;;  %v207_v56 = vcombine.high %v203_v50, %v203_v50  ;;  %672 = vmatprep.mubr.bf16.mxu1 %v206_v53  ;;  %v1067_v3 = vld [vmem:[%s1375_s1 + $0x1e0] sm:$0xff]   ;;  %v1071_v7 = vld [vmem:[%s1375_s1 + $0x1e8] sm:$0xff]   ;;  %v1074_v10 = vld [vmem:[%s1375_s1 + $0x170] sm:$0xff]  }
  0x13   :  { %v1068_v4 = vld [vmem:[%s1375_s1 + $0x120] sm:$0xff]   ;;  %v1072_v8 = vld [vmem:[%s1375_s1 + $0x128] sm:$0xff]  }
  0x14   :  { %923 = vmatpush3.bf16.msra.mxu0 %v1035_v18  ;;  %v1069_v5 = vld [vmem:[%s1375_s1 + $0x1a0] sm:$0xff]   ;;  %v1073_v9 = vld [vmem:[%s1375_s1 + $0x1a8] sm:$0xff]  }
  0x15   :  { %945 = vmatpush3.bf16.msra.mxu1 %v1036_v19  ;;  %924 = vmatprep.subr.bf16.mxu0 %v1037_v20 }
  0x16   :  { %946 = vmatprep.subr.bf16.mxu1 %v1038_v21 }
  0x18   :  { %925 = vmatpush3.bf16.msra.mxu0 %v1039_v22 }
  0x19   :  { %947 = vmatpush3.bf16.msra.mxu1 %v1040_v23  ;;  %926 = vmatprep.subr.bf16.mxu0 %v1041_v24 }
  0x1a   :  { %948 = vmatprep.subr.bf16.mxu1 %v1042_v25 }
  0x1c   :  { %927 = vmatpush3.bf16.msra.mxu0 %v1043_v26 }
  0x1d   :  { %949 = vmatpush3.bf16.msra.mxu1 %v1044_v27  ;;  %928 = vmatprep.subr.bf16.mxu0 %v1045_v29 }
  0x1e   :  { %950 = vmatprep.subr.bf16.mxu1 %v1046_v30 }
  0x20   :  { %929 = vmatpush3.bf16.msra.mxu0 %v1047_v31 }
  0x21   :  { %951 = vmatpush3.bf16.msra.mxu1 %v1048_v32  ;;  %958 = vmatprep.subr.bf16.mxu0 %v1050_v35 }
  0x22   :  { %980 = vmatprep.subr.bf16.mxu1 %v1051_v38 }
  0x23   :  { %633 = vmatmul.mubr.bf16.vlgmr.msra.gmra.mrb[0].mxu0 %v182_v45 }
  0x24   :  { %959 = vmatpush3.bf16.msra.mxu0 %v1052_v47  ;;  %673 = vmatmul.mubr.bf16.vlgmr.msra.gmra.mrb[0].mxu1 %v204_v51 }
  0x25   :  { %960 = vmatprep.subr.bf16.mxu0 %v1054_v52  ;;  %981 = vmatpush3.bf16.msra.mxu1 %v1053_v49 }
  0x26   :  { %712 = vmatprep.mubr.bf16.mxu0 %v203_v50  ;;  %982 = vmatprep.subr.bf16.mxu1 %v1055_v54 }
  0x27   :  { %752 = vmatprep.mubr.bf16.mxu1 %v207_v56 }
  0x28   :  { %961 = vmatpush3.bf16.msra.mxu0 %v1056_v55 }
  0x29   :  { %962 = vmatprep.subr.bf16.mxu0 %v1058_v58  ;;  %983 = vmatpush3.bf16.msra.mxu1 %v1057_v57 }
  0x2a   :  { %984 = vmatprep.subr.bf16.mxu1 %v1059_v59 }
  0x2c   :  { %963 = vmatpush3.bf16.msra.mxu0 %v1060_v60 }
  0x2d   :  { %964 = vmatprep.subr.bf16.mxu0 %v1062_v62  ;;  %985 = vmatpush3.bf16.msra.mxu1 %v1061_v61 }
  0x2e   :  { %986 = vmatprep.subr.bf16.mxu1 %v1063_v63 }
  0x30   :  { %965 = vmatpush3.bf16.msra.mxu0 %v1064_v0 }
  0x31   :  { %966 = vmatprep.subr.bf16.mxu0 %v1066_v2  ;;  %987 = vmatpush3.bf16.msra.mxu1 %v1065_v1 }
  0x32   :  { %988 = vmatprep.subr.bf16.mxu1 %v1067_v3 }
  0x34   :  { %967 = vmatpush3.bf16.msra.mxu0 %v1068_v4 }
  0x35   :  { %968 = vmatprep.subr.bf16.mxu0 %v1070_v6  ;;  %989 = vmatpush3.bf16.msra.mxu1 %v1069_v5 }
  0x36   :  { %10 = vsyncpa [#allocation3], 0  ;;  %990 = vmatprep.subr.bf16.mxu1 %v1071_v7  ;;  %v1075_v11 = vld [vmem:[%s1375_s1 + $0x1f0] sm:$0xff]   ;;  %v1078_v13 = vld [vmem:[%s1375_s1 + $0x178] sm:$0xff]   ;;  %v189_v17 = vrot.slane %v1251_v43, %v1247_v41  ;;  %v1109_v21 = vmov 0.0   ;;  %vm1110_vm0 = vmmov 0  }
  0x37   :  { %v1076_v12 = vld [vmem:[%s1375_s1 + $0x130] sm:$0xff]   ;;  %v1079_v15 = vld [vmem:[%s1375_s1 + $0x1f8] sm:$0xff]   ;;  %v1082_v20 = vld [vmem:[%s1377_s3] sm:$0xff]   ;;  %vm785_vm1 = vcmask 261120   ;;  %s1111_s25 = smov [#allocation2]   ;;  %vm829_vm2 = vcmask 58368  }
  0x38   :  { %969 = vmatpush3.bf16.msra.mxu0 %v1072_v8  ;;  %v1077_v14 = vld [vmem:[%s1375_s1 + $0x1b0] sm:$0xff]   ;;  %v1080_v16 = vld [vmem:[%s1375_s1 + $0x138] sm:$0xff]   ;;  %v205_v19 = vcombine.high %v189_v17, %v189_v17  ;;  %v1083_v22 = vld [vmem:[%s1377_s3 + $0x8] sm:$0xff]   ;;  %s837_s26 = sshll.u32 %s1111_s25, 4  ;;  %s838_s26 = int_to_ptr.vmem [resolvable:$true] %s837_s26 }
  0x39   :  { %970 = vmatprep.subr.bf16.mxu0 %v1074_v10  ;;  %991 = vmatpush3.bf16.msra.mxu1 %v1073_v9  ;;  %v1081_v18 = vld [vmem:[%s1375_s1 + $0x1b8] sm:$0xff]   ;;  %v845_v24 = vld [vmem:[%s1376_s2] ss:$0 sm:$0xff]  ;;  %s1084_s27 = scalar_lea.vmem %s838_s26, 32  ;;  %p1089_p1 = scmp.lt.s32.totalorder %s838_s26, %s838_s26 }
  0x3a   :  { %992 = vmatprep.subr.bf16.mxu1 %v1075_v11  ;;  %v910_v50 = vld [vmem:[%s1378_s4] ss:$0 sm:$0xff]  ;;  %p1085_p0 = scmp.ne.s32.totalorder %s838_s26, %s1084_s27  ;;  %p1090_p2 = scmp.lt.s32.totalorder %s1084_s27, %s1084_s27 }
  0x3c   :  { %971 = vmatpush3.bf16.msra.mxu0 %v1076_v12  ;;  %p1091_p3 = por %p1090_p2, %p1089_p1 }
  0x3d   :  { %972 = vmatprep.subr.bf16.mxu0 %v1078_v13  ;;  %993 = vmatpush3.bf16.msra.mxu1 %v1077_v14 }
  0x3e   :  { %994 = vmatprep.subr.bf16.mxu1 %v1079_v15  ;;  %p1092_p4 = pnand %p1091_p3, %p1085_p0 }
  0x40   :  { %973 = vmatpush3.bf16.msra.mxu0 %v1080_v16 }
  0x41   :  { %995 = vmatpush3.bf16.msra.mxu1 %v1081_v18  ;;  %1005 = vmatprep.subr.bf16.mxu0 %v1109_v21 }
  0x43   :  { %713 = vmatmul.mubr.bf16.vlgmr.msra.gmra.mrb[4].mxu0 %v189_v17 }
  0x44   :  { %753 = vmatmul.mubr.bf16.vlgmr.msra.gmra.mrb[4].mxu1 %v205_v19  ;;  %1006 = vmatpush3.bf16.msra.mxu0 %v1082_v20 }
  0x45   :  { %1007 = vmatprep.subr.bf16.mxu0 %v1109_v21  ;;  %1009 = vmatprep.mubr.msk.bf16.mxu0 %vm1110_vm0, %v1109_v21 }
  0x48   :  { %1008 = vmatpush3.bf16.msra.mxu0 %v1083_v22 }
  0xf6   :  { %v930_v23 = vpop.f32.mrb[0].mxu0 }
  0xf7   :  { %v931_v25 = vpop.f32.mrb[1].mxu0  ;;  %v952_v26 = vpop.f32.mrb[0].mxu1 }
  0xf8   :  { %v932_v27 = vadd.f32 %v931_v25, %v930_v23  ;;  %v933_v28 = vpop.f32.mrb[2].mxu0  ;;  %v953_v29 = vpop.f32.mrb[1].mxu1 }
  0xf9   :  { %v934_v30 = vpop.f32.mrb[3].mxu0  ;;  %v954_v32 = vadd.f32 %v953_v29, %v952_v26  ;;  %v955_v33 = vpop.f32.mrb[2].mxu1 }
  0xfa   :  { %v635_v31 = vadd.f32 %v932_v27, %v845_v24  ;;  %v956_v34 = vpop.f32.mrb[3].mxu1 }
  0xfc   :  { %v675_v35 = vadd.f32 %v954_v32, %v635_v31 }
 0x116   :  { %v974_v36 = vpop.f32.mrb[4].mxu0 }
 0x117   :  { %v975_v37 = vpop.f32.mrb[5].mxu0  ;;  %v996_v38 = vpop.f32.mrb[4].mxu1 }
 0x118   :  { %v976_v39 = vadd.f32 %v975_v37, %v974_v36  ;;  %v977_v40 = vpop.f32.mrb[6].mxu0  ;;  %v997_v41 = vpop.f32.mrb[5].mxu1 }
 0x119   :  { %v978_v42 = vpop.f32.mrb[7].mxu0  ;;  %v998_v44 = vadd.f32 %v997_v41, %v996_v38  ;;  %v999_v45 = vpop.f32.mrb[6].mxu1 }
 0x11a   :  { %v715_v43 = vadd.f32 %v976_v39, %v675_v35  ;;  %v1000_v46 = vpop.f32.mrb[7].mxu1 }
 0x11c   :  { %v755_v47 = vadd.f32 %v998_v44, %v715_v43 }
 0x11e   :  { %v760_v48 = vmax.f32 %v755_v47, 0.0 }
 0x120   :  { %v761_v49 = vpack.c.bf16 %v760_v48, %v760_v48 }
 0x122   :  { %1010 = vmatmul.mubr.msk.bf16.vlgmr.msra.gmra.mrb[8].mxu0 %vm785_vm1, %v761_v49 }
 0x1f5   :  { %v823_v51 = vpop.f32.mrb[8].mxu0 }
 0x1f6   :  { %v824_v52 = vadd.f32 %v910_v50, %v823_v51  ;;  %v1011_v53 = vpop.f32.mrb[9].mxu0 }
 0x1f7   :  { %v826_v54 = vpop.f32.mrb[10].mxu0 }
 0x1f8   :  { %v1012_v55 = vpop.f32.mrb[11].mxu0  ;;  %830 = vst.msk [vmem:[#allocation2] sm:$0x3] %vm829_vm2, %v824_v52 }
 0x1f9   :  { %1095 = shalt.err (!%p1092_p4)
}
 0x1fa   :  { %s1096_s4 = scalar_lea.hbm %s1379_s5, 32 }
 0x1fb   :  { %p1097_p5 = scmp.ne.s32.totalorder %s1379_s5, %s1096_s4  ;;  %p1100_p6 = scmp.lt.u32.totalorder %s1096_s4, %s1379_s5 }
 0x1fd   :  { %p1102_p7 = pnand %p1100_p6, %p1097_p5 }
 0x1ff   :  { %1105 = shalt.err (!%p1102_p7)
}
 0x200   :  { %840 = dma.vmem_to_hbm [thread:$0]  %s838_s26, 32, %s1379_s5, [#allocation3]  }
 0x201   :  { %1106 = dma.done.wait [#allocation3], 32  }
 0x202   :  { %1107 = vsyncadd [#allocation3], 4294967264 }
 0x203   :  { %844 = vsyncpa [#allocation3], 1 }

</bundles_post_ra>
